<compile_context>
chip_gen: v6e
topology: v6e:2x2x1
jax: 0.10.0
libtpu: 0.0.40
codegen_flags: <defaults>
</compile_context>

<pallas_src>
import functools
import math

import jax
import jax.numpy as jnp
from jax.experimental import pallas as pl
from jax.experimental.pallas import tpu as pltpu


def _pick_tile(dim, candidates):
    for c in candidates:
        if dim % c == 0:
            return c
    return dim  # fall back to the full (untiled) dimension


# --------------------------- Kernel 1: fused QKV projection ---------------------------
def qkv_proj_kernel(x_ref, w_ref, b_ref, o_ref):
    # x: (TM, H) bf16, w: (H, 3H) bf16 (resident), b: (1, 3H) f32, o: (TM, 3H) bf16
    acc = jnp.dot(x_ref[...], w_ref[...], preferred_element_type=jnp.float32)
    o_ref[...] = (acc + b_ref[...]).astype(o_ref.dtype)


# --------------------------- Kernel 2: flash self-attention ---------------------------
def flash_attn_kernel(q_ref, k_ref, v_ref, kmask_ref, qmask_ref, o_ref,
                      m_sc, l_sc, acc_sc, *, sm_scale):
    ki = pl.program_id(2)

    @pl.when(ki == 0)
    def _():
        m_sc[...] = jnp.full(m_sc.shape, -jnp.inf, m_sc.dtype)
        l_sc[...] = jnp.zeros(l_sc.shape, l_sc.dtype)
        acc_sc[...] = jnp.zeros(acc_sc.shape, acc_sc.dtype)

    q = q_ref[0]                                   # (TQ, D) bf16
    k = k_ref[0]                                   # (TK, D) bf16
    s = jax.lax.dot_general(q, k, (((1,), (1,)), ((), ())),
                            preferred_element_type=jnp.float32)   # (TQ, TK) f32
    # additive key-mask bias: masked keys -> -1e30 (multiplicative, no compare+select)
    s = s * sm_scale + (kmask_ref[0] - 1.0) * 1e30

    m_prev = m_sc[...]
    m_new = jnp.maximum(m_prev, s.max(axis=-1, keepdims=True))
    alpha = jnp.exp(m_prev - m_new)
    p = jnp.exp(s - m_new)
    l_sc[...] = alpha * l_sc[...] + p.sum(axis=-1, keepdims=True)
    acc_sc[...] = alpha * acc_sc[...] + jnp.dot(
        p.astype(v_ref.dtype), v_ref[0], preferred_element_type=jnp.float32)
    m_sc[...] = m_new

    @pl.when(ki == pl.num_programs(2) - 1)
    def _():
        inv_l = pl.reciprocal(l_sc[...], approx=True)
        # qmask zeroing reproduces XSoftmax's zeroed probs on fully-masked query rows
        o_ref[0] = (acc_sc[...] * inv_l * qmask_ref[0]).astype(o_ref.dtype)


# ------------------ Kernel 3: output dense + residual + LayerNorm ---------------------
def self_output_kernel(ctx_ref, res_ref, w_ref, b_ref, g_ref, be_ref, o_ref, *, eps):
    h = jnp.dot(ctx_ref[...], w_ref[...], preferred_element_type=jnp.float32)
    h = h + b_ref[...]
    # TODO(synk): StableDropout omitted (identity in eval / p=0).
    y = h + res_ref[...].astype(jnp.float32)
    mean = jnp.mean(y, axis=-1, keepdims=True)
    var = jnp.mean((y - mean) ** 2, axis=-1, keepdims=True)
    out = (y - mean) * jax.lax.rsqrt(var + eps)
    o_ref[...] = (out * g_ref[...] + be_ref[...]).astype(o_ref.dtype)


# --------------------------------- wrapper ---------------------------------
def bert_attention_forward(hidden_states, attention_mask, params, *, num_heads, eps=1e-7):
    """hidden_states: (B, L, H) f32; attention_mask: (B, L) {0,1}.
    params: w_in (3H,H), q_bias (H,), v_bias (H,), w_o (H,H), b_o (H,), gamma (H,), beta (H,)."""
    w_in, q_bias, v_bias = params["w_in"], params["q_bias"], params["v_bias"]
    w_o, b_o = params["w_o"], params["b_o"]
    gamma, beta = params["gamma"], params["beta"]

    B, L, H = hidden_states.shape
    assert H % num_heads == 0
    nh = num_heads
    D = H // nh
    M = B * L
    sm_scale = 1.0 / math.sqrt(D)   # scale_factor == 1 (no relative attention)

    VMEM_LIMIT = 64 * 1024 * 1024

    # ---- parameter / mask prep (glue) ----
    w_qkv = jnp.transpose(w_in, (1, 0)).astype(jnp.bfloat16)               # (H, 3H)
    qkv_bias = jnp.concatenate(
        [q_bias, jnp.zeros_like(q_bias), v_bias]).reshape(1, 3 * H).astype(jnp.float32)
    w_out = jnp.transpose(w_o, (1, 0)).astype(jnp.bfloat16)                # (H, H)
    b_out = b_o.reshape(1, H).astype(jnp.float32)
    g = gamma.reshape(1, H).astype(jnp.float32)
    be = beta.reshape(1, H).astype(jnp.float32)

    maskf = attention_mask.astype(jnp.float32)
    kmask = maskf.reshape(B, 1, L)
    qmask = maskf.reshape(B, L, 1)

    row_params = pltpu.CompilerParams(
        dimension_semantics=("parallel",), vmem_limit_bytes=VMEM_LIMIT)

    # ---- kernel 1: fused QKV projection over flattened B*L rows (fills MXU M dim) ----
    TM = _pick_tile(M, (512, 256, 128, 64, 32, 16, 8))
    x_rows = hidden_states.reshape(M, H).astype(jnp.bfloat16)
    qkv = pl.pallas_call(
        qkv_proj_kernel,
        out_shape=jax.ShapeDtypeStruct((M, 3 * H), jnp.bfloat16),
        grid=(M // TM,),
        in_specs=[
            pl.BlockSpec((TM, H), lambda i: (i, 0)),
            pl.BlockSpec((H, 3 * H), lambda i: (0, 0)),   # constant index -> stays resident
            pl.BlockSpec((1, 3 * H), lambda i: (0, 0)),
        ],
        out_specs=pl.BlockSpec((TM, 3 * H), lambda i: (i, 0)),
        compiler_params=row_params,
    )(x_rows, w_qkv, qkv_bias)

    # split heads: (M, 3H) -> (3, B*nh, L, D)
    qkv = qkv.reshape(B, L, 3, nh, D)
    qkv = jnp.transpose(qkv, (2, 0, 3, 1, 4)).reshape(3, B * nh, L, D)
    q, k, v = qkv[0], qkv[1], qkv[2]

    # ---- kernel 2: flash attention, grid over (batch*head, q tiles, kv tiles) ----
    TQ = _pick_tile(L, (256, 128))
    TK = _pick_tile(L, (512, 256, 128))
    BN = B * nh
    flash = functools.partial(flash_attn_kernel, sm_scale=sm_scale)
    ctx = pl.pallas_call(
        flash,
        out_shape=jax.ShapeDtypeStruct((BN, L, D), jnp.bfloat16),
        grid=(BN, L // TQ, L // TK),
        in_specs=[
            pl.BlockSpec((1, TQ, D), lambda bn, qi, ki: (bn, qi, 0)),
            pl.BlockSpec((1, TK, D), lambda bn, qi, ki: (bn, ki, 0)),
            pl.BlockSpec((1, TK, D), lambda bn, qi, ki: (bn, ki, 0)),
            pl.BlockSpec((1, 1, TK), lambda bn, qi, ki: (bn // nh, 0, ki)),
            pl.BlockSpec((1, TQ, 1), lambda bn, qi, ki: (bn // nh, qi, 0)),
        ],
        out_specs=pl.BlockSpec((1, TQ, D), lambda bn, qi, ki: (bn, qi, 0)),
        scratch_shapes=[
            pltpu.VMEM((TQ, 1), jnp.float32),   # running max
            pltpu.VMEM((TQ, 1), jnp.float32),   # running denom
            pltpu.VMEM((TQ, D), jnp.float32),   # running context accumulator
        ],
        compiler_params=pltpu.CompilerParams(
            dimension_semantics=("parallel", "parallel", "arbitrary"),
            vmem_limit_bytes=VMEM_LIMIT),
    )(q, k, v, kmask, qmask)

    # merge heads back: (B*nh, L, D) -> (B*L, H)
    ctx = jnp.transpose(ctx.reshape(B, nh, L, D), (0, 2, 1, 3)).reshape(M, H)

    # ---- kernel 3: output dense + residual + LayerNorm over flattened rows ----
    res_rows = hidden_states.reshape(M, H).astype(jnp.float32)
    out_kernel = functools.partial(self_output_kernel, eps=eps)
    out = pl.pallas_call(
        out_kernel,
        out_shape=jax.ShapeDtypeStruct((M, H), jnp.float32),
        grid=(M // TM,),
        in_specs=[
            pl.BlockSpec((TM, H), lambda i: (i, 0)),
            pl.BlockSpec((TM, H), lambda i: (i, 0)),
            pl.BlockSpec((H, H), lambda i: (0, 0)),       # constant index -> resident
            pl.BlockSpec((1, H), lambda i: (0, 0)),
            pl.BlockSpec((1, H), lambda i: (0, 0)),
            pl.BlockSpec((1, H), lambda i: (0, 0)),
        ],
        out_specs=pl.BlockSpec((TM, H), lambda i: (i, 0)),
        compiler_params=row_params,
    )(ctx, res_rows, w_out, b_out, g, be)

    return out.reshape(B, L, H)


# --------------------------------- pure-JAX reference ---------------------------------
def _bf16(x):
    return x.astype(jnp.bfloat16)


def reference_forward(hidden_states, attention_mask, params, *, num_heads, eps):
    w_in, q_bias, v_bias = params["w_in"], params["q_bias"], params["v_bias"]
    w_o, b_o = params["w_o"], params["b_o"]
    gamma, beta = params["gamma"], params["beta"]
    B, L, H = hidden_states.shape
    D = H // num_heads
    scale = 1.0 / math.sqrt(D)

    qkv = jnp.dot(_bf16(hidden_states), _bf16(w_in.T),
                  preferred_element_type=jnp.float32)
    bias = jnp.concatenate([q_bias, jnp.zeros_like(q_bias), v_bias])
    qkv = (qkv + bias).astype(jnp.bfloat16)
    qkv = qkv.reshape(B, L, 3, num_heads, D)
    q = jnp.transpose(qkv[:, :, 0], (0, 2, 1, 3))
    k = jnp.transpose(qkv[:, :, 1], (0, 2, 1, 3))
    v = jnp.transpose(qkv[:, :, 2], (0, 2, 1, 3))

    s = jnp.einsum('bnqd,bnkd->bnqk', q, k,
                   preferred_element_type=jnp.float32) * scale
    maskf = attention_mask.astype(jnp.float32)
    km = maskf[:, None, None, :]
    qm = maskf[:, None, :, None]
    s = s + (km - 1.0) * 1e30
    p = jax.nn.softmax(s, axis=-1)
    ctx = jnp.einsum('bnqk,bnkd->bnqd', _bf16(p), v,
                     preferred_element_type=jnp.float32)
    ctx = (ctx * qm).astype(jnp.bfloat16)
    ctx = jnp.transpose(ctx, (0, 2, 1, 3)).reshape(B, L, H)

    h = jnp.dot(_bf16(ctx), _bf16(w_o.T), preferred_element_type=jnp.float32) + b_o
    y = h + hidden_states
    mean = y.mean(-1, keepdims=True)
    var = ((y - mean) ** 2).mean(-1, keepdims=True)
    return (y - mean) / jnp.sqrt(var + eps) * gamma + beta


if __name__ == "__main__":
    B, L, H, N_HEADS = 2, 16, 64, 4
    eps = 1e-7

    key = jax.random.PRNGKey(0)
    ks = jax.random.split(key, 6)

    hidden_states = jax.random.normal(ks[0], (B, L, H), jnp.float32)
    # attention mask: last 4 positions of batch 1 are padding
    attention_mask = jnp.ones((B, L), jnp.int32).at[1, -4:].set(0)

    params = dict(
        w_in=jax.random.normal(ks[1], (3 * H, H), jnp.float32) * (1.0 / math.sqrt(H)),
        q_bias=jax.random.normal(ks[2], (H,), jnp.float32) * 0.02,
        v_bias=jax.random.normal(ks[3], (H,), jnp.float32) * 0.02,
        w_o=jax.random.normal(ks[4], (H, H), jnp.float32) * (1.0 / math.sqrt(H)),
        b_o=jax.random.normal(ks[5], (H,), jnp.float32) * 0.02,
        gamma=jnp.ones((H,), jnp.float32),
        beta=jnp.zeros((H,), jnp.float32),
    )

    out = bert_attention_forward(hidden_states, attention_mask, params,
                                 num_heads=N_HEADS, eps=eps)
    out = jax.block_until_ready(out)

    ref = reference_forward(hidden_states, attention_mask, params,
                            num_heads=N_HEADS, eps=eps)

    assert out.shape == (B, L, H)
    assert bool(jnp.all(jnp.isfinite(out))), "non-finite values in kernel output"
    max_diff = float(jnp.max(jnp.abs(out - ref)))
    assert jnp.allclose(out, ref, atol=2e-2, rtol=2e-2), \
        f"mismatch vs reference: max abs diff {max_diff}"

    print("KERNEL_OK")
</pallas_src>

<mosaic_0001>
module attributes {stable_mosaic.version = 11 : i64} {
  func.func @qkv_proj_kernel(%arg0: i32, %arg1: memref<32x64xbf16, #tpu.memory_space<vmem>>, %arg2: memref<64x192xbf16, #tpu.memory_space<vmem>>, %arg3: memref<1x192xf32, #tpu.memory_space<vmem>>, %arg4: memref<32x192xbf16, #tpu.memory_space<vmem>>) attributes {dimension_semantics = [#tpu.dimension_semantics<parallel>], iteration_bounds = array<i64: 1>, scalar_prefetch = 0 : i64, scratch_operands = 0 : i64, tpu.core_type = #tpu.core_type<tc>, window_params = [{transform_indices = @transform_0, window_bounds = array<i64: 32, 64>}, {pipeline_mode = #tpu.pipeline_mode<synchronous>, transform_indices = @transform_1, window_bounds = array<i64: 64, 192>}, {pipeline_mode = #tpu.pipeline_mode<synchronous>, transform_indices = @transform_2, window_bounds = array<i64: 1, 192>}, {transform_indices = @transform_3, window_bounds = array<i64: 32, 192>}]} {
    %c0 = arith.constant 0 : index
    %c0_0 = arith.constant 0 : index
    %0 = vector.load %arg1[%c0, %c0_0] : memref<32x64xbf16, #tpu.memory_space<vmem>>, vector<32x64xbf16>
    %c0_1 = arith.constant 0 : index
    %c0_2 = arith.constant 0 : index
    %1 = vector.load %arg2[%c0_1, %c0_2] : memref<64x192xbf16, #tpu.memory_space<vmem>>, vector<64x192xbf16>
    %cst = arith.constant dense<0.000000e+00> : vector<32x192xf32>
    %2 = tpu.matmul %0, %1, %cst {dimension_numbers = #tpu.dot_dimension_numbers<[1], [0], [0], [1], [0, 0, 1, 1], [], []>} : vector<32x64xbf16>, vector<64x192xbf16>, vector<32x192xf32> -> vector<32x192xf32>
    %c0_3 = arith.constant 0 : index
    %c0_4 = arith.constant 0 : index
    %3 = vector.load %arg3[%c0_3, %c0_4] : memref<1x192xf32, #tpu.memory_space<vmem>>, vector<1x192xf32>
    %4 = vector.broadcast %3 : vector<1x192xf32> to vector<32x192xf32>
    %5 = arith.addf %2, %4 : vector<32x192xf32>
    %6 = arith.truncf %5 : vector<32x192xf32> to vector<32x192xbf16>
    %c0_5 = arith.constant 0 : index
    %c0_6 = arith.constant 0 : index
    %7 = vector.load %arg4[%c0_5, %c0_6] : memref<32x192xbf16, #tpu.memory_space<vmem>>, vector<32x192xbf16>
    tpu.vector_store %arg4[%c0_5, %c0_6], %6 {strides = array<i32>} : memref<32x192xbf16, #tpu.memory_space<vmem>>, vector<32x192xbf16>,
    return
  }
  func.func @transform_0(%arg0: i32) -> (i32, i32) {
    %c0_i32 = arith.constant 0 : i32
    %c0_i32_0 = arith.constant 0 : i32
    return %arg0, %c0_i32 : i32, i32
  }
  func.func @transform_1(%arg0: i32) -> (i32, i32) {
    %c0_i32 = arith.constant 0 : i32
    %c0_i32_0 = arith.constant 0 : i32
    %c0_i32_1 = arith.constant 0 : i32
    return %c0_i32, %c0_i32_0 : i32, i32
  }
  func.func @transform_2(%arg0: i32) -> (i32, i32) {
    %c0_i32 = arith.constant 0 : i32
    %c0_i32_0 = arith.constant 0 : i32
    %c0_i32_1 = arith.constant 0 : i32
    return %c0_i32, %c0_i32_0 : i32, i32
  }
  func.func @transform_3(%arg0: i32) -> (i32, i32) {
    %c0_i32 = arith.constant 0 : i32
    %c0_i32_0 = arith.constant 0 : i32
    return %arg0, %c0_i32 : i32, i32
  }
}

</mosaic_0001>

<bundles_post_ra>
// kernel: tpu_custom_call.1
= control target key start
LH: loop header
LB: loop body
LE: loop exit
PB: predicated region body
PF: predicated region fallthrough
CT: control target
= control target key end

     0   :  { %8 = vsyncpa [#allocation3], 0  ;;  %s401_s0 = inlined_call_operand.hbm [shape: bf16[32,64], index: 0, kind: input, shape index: {}]   ;;  %s402_s1 = inlined_call_operand.hbm [shape: bf16[64,192], index: 1, kind: input, shape index: {}]   ;;  %s403_s2 = inlined_call_operand.vmem [shape: f32[1,192], index: 2, kind: input, shape index: {}]   ;;  %s404_s3 = inlined_call_operand.hbm [shape: bf16[32,192], index: 3, kind: output, shape index: {}]  }
   0x1   :  { %9 = vsyncpa [#allocation6], 0 }
   0x2   :  { %10 = vsyncpa [#allocation4], 0  ;;  %s343_s12 = smov [#allocation2]  }
   0x3   :  { %s16_s13 = sshll.u32 %s343_s12, 4  ;;  %s17_s13 = int_to_ptr.vmem [resolvable:$true] %s16_s13 }
   0x4   :  { %s285_s14 = scalar_lea.vmem %s17_s13, 256  ;;  %p290_p1 = scmp.lt.s32.totalorder %s17_s13, %s17_s13 }
   0x5   :  { %p286_p0 = scmp.ne.s32.totalorder %s17_s13, %s285_s14  ;;  %p291_p2 = scmp.lt.s32.totalorder %s285_s14, %s285_s14 }
   0x7   :  { %p292_p3 = por %p291_p2, %p290_p1 }
   0x9   :  { %p293_p4 = pnand %p292_p3, %p286_p0 }
   0xb   :  { %296 = shalt.err (!%p293_p4)
}
   0xc   :  { %s344_s15 = smov 64   ;;  %s345_s16 = smov 4  }
   0xd   :  { %22 = dma.hbm_to_vmem [thread:$0]  %s401_s0, 256, %s17_s13, [#allocation3], %s344_s15, %s344_s15, %s345_s16  }
   0xe   :  { %s346_s19 = smov [#allocation5]  }
   0xf   :  { %s28_s20 = sshll.u32 %s346_s19, 4  ;;  %s29_s20 = int_to_ptr.vmem [resolvable:$true] %s28_s20 }
  0x10   :  { %s305_s21 = scalar_lea.vmem %s29_s20, 1024  ;;  %p310_p6 = scmp.lt.s32.totalorder %s29_s20, %s29_s20 }
  0x11   :  { %p306_p5 = scmp.ne.s32.totalorder %s29_s20, %s305_s21  ;;  %p311_p7 = scmp.lt.s32.totalorder %s305_s21, %s305_s21 }
  0x13   :  { %p312_p8 = por %p311_p7, %p310_p6 }
  0x15   :  { %p313_p9 = pnand %p312_p8, %p306_p5 }
  0x17   :  { %316 = shalt.err (!%p313_p9)
}
  0x18   :  { %s347_s22 = smov 128   ;;  %s348_s23 = smov 8  }
  0x19   :  { %34 = dma.hbm_to_vmem [thread:$0]  %s402_s1, 1024, %s29_s20, [#allocation6], %s347_s22, %s347_s22, %s348_s23  }
  0x1a   :  { %337 = dma.done.wait [#allocation3], 256  }
  0x1b   :  { %338 = vsyncadd [#allocation3], 4294967040 }
  0x1c   :  { %339 = dma.done.wait [#allocation6], 1024  }
  0x1d   :  { %340 = vsyncadd [#allocation6], 4294966272  ;;  %v349_v0 = vmov 0   ;;  %v263_v1 = vld [vmem:[#allocation5 + $0x34] ss:$8 sps:$4 sm:$0xff]   ;;  %vm118_vm0 = vcmask 523264   ;;  %v58_v11 = vlaneseq }
  0x1e   :  { %157 = vmatprep.mubr.bf16.mxu0 %v349_v0  ;;  %167 = vmatprep.mubr.bf16.mxu1 %v349_v0  ;;  %v265_v2 = vld [vmem:[#allocation5 + $0x30] ss:$8 sps:$4 sm:$0xff]   ;;  %v266_v3 = vld [vmem:[#allocation5 + $0x24] ss:$8 sps:$4 sm:$0xff]   ;;  %v268_v4 = vld [vmem:[#allocation5 + $0x20] ss:$8 sps:$4 sm:$0xff]  }
  0x1f   :  { %133 = vmatprep.subr.bf16.mxu0 %v263_v1  ;;  %247 = vmatprep.subr.bf16.mxu1 %v263_v1  ;;  %v269_v5 = vld [vmem:[#allocation5 + $0x14] ss:$8 sps:$4 sm:$0xff]   ;;  %v271_v6 = vld [vmem:[#allocation5 + $0x10] ss:$8 sps:$4 sm:$0xff]   ;;  %v272_v7 = vld [vmem:[#allocation5 + $0x4] ss:$8 sps:$4 sm:$0xff]  }
  0x20   :  { %134 = vmatpush1.bf16.msra.mxu0 %v265_v2  ;;  %251 = vmatpush1.bf16.msra.mxu1 %v265_v2  ;;  %v274_v8 = vld [vmem:[#allocation5] ss:$8 sps:$4 sm:$0xff]   ;;  %v275_v9 = vld [vmem:[#allocation2] sm:$0xff]   ;;  %v276_v10 = vld [vmem:[#allocation2 + $0x8] sm:$0xff]   ;;  %v59_v12 = vshrl.u32 %v58_v11, 7  ;;  %vm202_vm1 = vcmask 1043456  }
  0x21   :  { %135 = vmatprep.subr.bf16.mxu0 %v266_v3  ;;  %248 = vmatprep.subr.bf16.mxu1 %v266_v3  ;;  %v56_v15 = vld [vmem:[%s403_s2] sm:$0x3]  ;;  %vm203_vm2 = vcmask 523268   ;;  %s350_s2 = smov [#allocation7]  }
  0x22   :  { %v60_v13 = vsub.s32 0, %v59_v12  ;;  %v64_v14 = vsub.s32 1, %v59_v12  ;;  %vm383_vm3 = vmor %vm203_vm2, %vm202_vm1  ;;  %s214_s26 = sshll.u32 %s350_s2, 4  ;;  %s215_s26 = int_to_ptr.vmem [resolvable:$true] %s214_s26 }
  0x23   :  { %s317_s27 = scalar_lea.vmem %s215_s26, 512  ;;  %p322_p11 = scmp.lt.s32.totalorder %s215_s26, %s215_s26 }
  0x24   :  { %136 = vmatpush1.bf16.msra.mxu0 %v268_v4  ;;  %252 = vmatpush1.bf16.msra.mxu1 %v268_v4  ;;  %v61_v16 = vrot.slane %v56_v15, %v60_v13  ;;  %v65_v17 = vrot.slane %v56_v15, %v64_v14  ;;  %p318_p10 = scmp.ne.s32.totalorder %s215_s26, %s317_s27  ;;  %p323_p12 = scmp.lt.s32.totalorder %s317_s27, %s317_s27 }
  0x25   :  { %137 = vmatprep.subr.bf16.mxu0 %v269_v5  ;;  %249 = vmatprep.subr.bf16.mxu1 %v269_v5 }
  0x26   :  { %p324_p13 = por %p323_p12, %p322_p11 }
  0x28   :  { %138 = vmatpush1.bf16.msra.mxu0 %v271_v6  ;;  %253 = vmatpush1.bf16.msra.mxu1 %v271_v6  ;;  %p325_p0 = pnand %p324_p13, %p318_p10 }
  0x29   :  { %139 = vmatprep.subr.bf16.mxu0 %v272_v7  ;;  %250 = vmatprep.subr.bf16.mxu1 %v272_v7 }
  0x2c   :  { %140 = vmatpush1.bf16.msra.mxu0 %v274_v8  ;;  %254 = vmatpush1.bf16.msra.mxu1 %v274_v8 }
  0x2f   :  { %237 = vmatmul.mubr.msk.bf16.vlgmr.msra.gmra.mxu0 %vm118_vm0, %v275_v9  ;;  %238 = vmatmul.mubr.msk.bf16.vlgmr.msra.gmra.mxu1 %vm118_vm0, %v276_v10 }
  0xef   :  { %v159_v18 = vpop.f32.mrf.mxu0  ;;  %v169_v19 = vpop.f32.mrf.mxu1 }
  0xf0   :  { %v160_v22 = vadd.f32 %v159_v18, %v61_v16  ;;  %v170_v23 = vadd.f32 %v169_v19, %v61_v16 }
  0xf1   :  { %v161_v20 = vpop.f32.mrf.mxu0  ;;  %v171_v21 = vpop.f32.mrf.mxu1 }
  0xf2   :  { %v162_v24 = vadd.f32 %v161_v20, %v65_v17  ;;  %v172_v25 = vadd.f32 %v171_v21, %v65_v17 }
  0xf3   :  { %v163_v27 = vpop.f32.mrf.mxu0  ;;  %v173_v28 = vpop.f32.mrf.mxu1 }
  0xf4   :  { %v243_v29 = vpack.c.bf16 %v162_v24, %v160_v22  ;;  %v245_v30 = vpack.c.bf16 %v172_v25, %v170_v23  ;;  %v164_v33 = vadd.f32 %v163_v27, %v61_v16  ;;  %v174_v34 = vadd.f32 %v173_v28, %v61_v16 }
  0xf5   :  { %v165_v31 = vpop.f32.mrf.mxu0  ;;  %v175_v32 = vpop.f32.mrf.mxu1 }
  0xf6   :  { %205 = vst.msk [vmem:[#allocation7] sm:$0xff] %vm383_vm3, %v243_v29  ;;  %207 = vst.msk [vmem:[#allocation7 + $0x10] sm:$0xff] %vm383_vm3, %v245_v30  ;;  %v166_v35 = vadd.f32 %v165_v31, %v65_v17  ;;  %v176_v36 = vadd.f32 %v175_v32, %v65_v17 }
  0xf8   :  { %v244_v37 = vpack.c.bf16 %v166_v35, %v164_v33  ;;  %v246_v38 = vpack.c.bf16 %v176_v36, %v174_v34 }
  0xfa   :  { %206 = vst.msk [vmem:[#allocation7 + $0x8] sm:$0xff] %vm383_vm3, %v244_v37  ;;  %208 = vst.msk [vmem:[#allocation7 + $0x18] sm:$0xff] %vm383_vm3, %v246_v38 }
  0xfb   :  { %328 = shalt.err (!%p325_p0)
}
  0xfc   :  { %220 = dma.vmem_to_hbm [thread:$0]  %s215_s26, 512, %s404_s3, [#allocation4], %s347_s22, %s347_s22, %s348_s23  }
  0xfd   :  { %341 = dma.done.wait [#allocation4], 512  }
  0xfe   :  { %342 = vsyncadd [#allocation4], 4294966784 }
  0xff   :  { %224 = vsyncpa [#allocation3], 1 }
 0x100   :  { %225 = vsyncpa [#allocation6], 1 }
 0x101   :  { %226 = vsyncpa [#allocation4], 1 }

</bundles_post_ra>
